<compile_context>
chip_gen: v6e
topology: v6e:2x2x1
jax: 0.10.0
libtpu: 0.0.40
codegen_flags: <defaults>
</compile_context>

<pallas_src>
import functools

import jax
import jax.numpy as jnp
from jax import lax
from jax.experimental import pallas as pl
from jax.experimental.pallas import tpu as pltpu

EPS = 1e-5
LANE = 128
VMEM_LIMIT = 32 * 1024 * 1024
TILE_BUDGET_BYTES = 4 * 1024 * 1024


# --------------------------------------------------------------------------------------
# Kernels
# --------------------------------------------------------------------------------------
def _make_conv1_kernel(n_ph, tap_map, l_out, use_projection):
    """Pass A: conv1 (+ optional 1x1 projection conv) + per-tile channel stats."""

    def kernel(*refs):
        phase_refs = refs[:n_ph]
        if use_projection:
            w1_ref, wsc_ref = refs[n_ph], refs[n_ph + 1]
            y1_ref, sc_ref, st1_ref, stsc_ref = refs[n_ph + 2:]
        else:
            w1_ref = refs[n_ph]
            y1_ref, st1_ref = refs[n_ph + 1:]

        nt = y1_ref.shape[0]
        cp = y1_ref.shape[-1]

        # 3 conv taps as contiguous static slices of the phase blocks (no im2col in HBM).
        taps = [phase_refs[p][:, off:off + l_out, :] for (p, off) in tap_map]

        # conv1: single fused bf16 matmul, f32 accumulation on the MXU.
        xw = jnp.concatenate(taps, axis=-1).astype(jnp.bfloat16)
        y1 = jnp.dot(xw.reshape(nt * l_out, xw.shape[-1]), w1_ref[...],
                     preferred_element_type=jnp.float32)
        y1_ref[...] = y1.reshape(nt, l_out, cp)
        st1_ref[...] = jnp.concatenate(
            [jnp.sum(y1, axis=0, keepdims=True),
             jnp.sum(y1 * y1, axis=0, keepdims=True)], axis=0).reshape(1, 2, cp)

        if use_projection:
            # 1x1 projection conv: reuses the center tap (= x at the strided positions).
            xmid = taps[1].astype(jnp.bfloat16)
            sc = jnp.dot(xmid.reshape(nt * l_out, xmid.shape[-1]), wsc_ref[...],
                         preferred_element_type=jnp.float32)
            sc_ref[...] = sc.reshape(nt, l_out, cp)
            stsc_ref[...] = jnp.concatenate(
                [jnp.sum(sc, axis=0, keepdims=True),
                 jnp.sum(sc * sc, axis=0, keepdims=True)], axis=0).reshape(1, 2, cp)

    return kernel


def _make_conv2_kernel(l_out):
    """Pass B: folded bn1 affine + relu + conv2 (fused taps) + per-tile channel stats."""

    def kernel(y1_ref, a1_ref, c1_ref, w2_ref, y2_ref, st2_ref):
        nt, _, cp = y1_ref.shape
        h1 = jnp.maximum(y1_ref[...] * a1_ref[...] + c1_ref[...], 0.0)   # bn1 + relu (f32)

        # conv2 zero padding via value shifts -- no padded scratch, no zero-fill pass.
        z = jnp.zeros((nt, 1, cp), jnp.float32)
        h_m1 = jnp.concatenate([z, h1[:, :l_out - 1, :]], axis=1)        # h1[j-1]
        h_p1 = jnp.concatenate([h1[:, 1:, :], z], axis=1)                # h1[j+1]

        xw = jnp.concatenate([h_m1, h1, h_p1], axis=-1).astype(jnp.bfloat16)
        y2 = jnp.dot(xw.reshape(nt * l_out, 3 * cp), w2_ref[...],
                     preferred_element_type=jnp.float32)
        y2_ref[...] = y2.reshape(nt, l_out, cp)
        st2_ref[...] = jnp.concatenate(
            [jnp.sum(y2, axis=0, keepdims=True),
             jnp.sum(y2 * y2, axis=0, keepdims=True)], axis=0).reshape(1, 2, cp)

    return kernel


def _make_out_kernel(use_projection, l_out):
    """Pass C: folded bn2 / bn_sc affines + residual add + relu (pure elementwise)."""

    if use_projection:
        def kernel(y2_ref, sc_ref, a2_ref, c2_ref, asc_ref, csc_ref, o_ref):
            y2n = y2_ref[...] * a2_ref[...] + c2_ref[...]
            scn = sc_ref[...] * asc_ref[...] + csc_ref[...]
            o_ref[...] = jnp.maximum(y2n + scn, 0.0).astype(o_ref.dtype)
    else:
        def kernel(y2_ref, xp_ref, a2_ref, c2_ref, o_ref):
            y2n = y2_ref[...] * a2_ref[...] + c2_ref[...]
            res = xp_ref[:, 1:l_out + 1, :]                              # identity shortcut
            o_ref[...] = jnp.maximum(y2n + res, 0.0).astype(o_ref.dtype)

    return kernel


# --------------------------------------------------------------------------------------
# Wrapper
# --------------------------------------------------------------------------------------
def _round_up(v, m):
    return -(-v // m) * m


def _fold_bn(stats, gamma, beta, count, cp):
    """Single-pass BN: fold (mean, var, gamma, beta) into per-channel scale + shift."""
    s, s2 = stats[0], stats[1]
    mean = s / count
    var = jnp.maximum(s2 / count - mean * mean, 0.0)
    g = jnp.pad(gamma.astype(jnp.float32), (0, cp - gamma.shape[0]))
    b = jnp.pad(beta.astype(jnp.float32), (0, cp - beta.shape[0]))
    a = g * lax.rsqrt(var + EPS)
    c = b - mean * a
    return a.reshape(1, 1, cp), c.reshape(1, 1, cp)


def _pick_n_tile(n, per_sample_bytes):
    nt = max(1, min(n, TILE_BUDGET_BYTES // max(per_sample_bytes, 1)))
    nt = int(nt)
    while n % nt:
        nt -= 1
    return nt


def basic_block_1d(x_ncl, params, *, stride, n_tile=None):
    """x_ncl: (N, Cin, L) float32 (PyTorch Conv1d layout).  Returns (N, Cout, L_out)."""
    w1, w2 = params["w1"], params["w2"]
    Cout, Cin, K = w1.shape
    N, _, L = x_ncl.shape
    L_out = (L - 1) // stride + 1
    use_projection = (stride != 1) or (Cin != Cout)

    Cin_p = _round_up(Cin, LANE)
    Cout_p = _round_up(Cout, LANE)

    # ---- input prep: NCL -> NLC, one zero-pad, phase de-interleave for the stride ----
    phase_ids = sorted({k % stride for k in range(K)})
    tap_map = [(phase_ids.index(k % stride), k // stride) for k in range(K)]
    max_off = max(off for _, off in tap_map)
    Lph = L_out + max_off

    x = jnp.transpose(x_ncl, (0, 2, 1)).astype(jnp.float32)               # (N, L, Cin)
    xp = jnp.pad(x, ((0, 0), (1, 1), (0, Cin_p - Cin)))                   # (N, L+2, Cin_p)
    phases = []
    for p in phase_ids:
        ph = xp[:, p::stride, :]
        if ph.shape[1] < Lph:
            ph = jnp.pad(ph, ((0, 0), (0, Lph - ph.shape[1]), (0, 0)))
        elif ph.shape[1] > Lph:
            ph = ph[:, :Lph, :]
        phases.append(ph)
    n_ph = len(phases)

    # ---- matmul-friendly, lane-dense, bf16 weights ----
    w1t = jnp.transpose(w1, (2, 1, 0))                                    # (K, Cin, Cout)
    w1f = jnp.pad(w1t, ((0, 0), (0, Cin_p - Cin), (0, Cout_p - Cout)))
    w1f = w1f.reshape(K * Cin_p, Cout_p).astype(jnp.bfloat16)
    w2t = jnp.transpose(w2, (2, 1, 0))                                    # (K, Cout, Cout)
    w2f = jnp.pad(w2t, ((0, 0), (0, Cout_p - Cout), (0, Cout_p - Cout)))
    w2f = w2f.reshape(K * Cout_p, Cout_p).astype(jnp.bfloat16)
    if use_projection:
        wscf = jnp.pad(params["wsc"][:, :, 0].T,
                       ((0, Cin_p - Cin), (0, Cout_p - Cout))).astype(jnp.bfloat16)

    # ---- batch tiling ----
    if n_tile is None:
        per_sample = 4 * (n_ph * Lph * Cin_p + 4 * (L_out + 2) * Cout_p)
        n_tile = _pick_n_tile(N, per_sample)
    else:
        n_tile = int(n_tile)
        while N % n_tile:
            n_tile -= 1
    G = N // n_tile
    grid = (G,)
    count = float(N * L_out)

    cparams = pltpu.CompilerParams(dimension_semantics=("parallel",),
                                   vmem_limit_bytes=VMEM_LIMIT)

    ph_spec = pl.BlockSpec((n_tile, Lph, Cin_p), lambda i: (i, 0, 0))
    act_spec = pl.BlockSpec((n_tile, L_out, Cout_p), lambda i: (i, 0, 0))
    stp_spec = pl.BlockSpec((1, 2, Cout_p), lambda i: (i, 0, 0))
    par_spec = pl.BlockSpec((1, 1, Cout_p), lambda i: (0, 0, 0))
    w1_spec = pl.BlockSpec((K * Cin_p, Cout_p), lambda i: (0, 0))
    w2_spec = pl.BlockSpec((K * Cout_p, Cout_p), lambda i: (0, 0))
    wsc_spec = pl.BlockSpec((Cin_p, Cout_p), lambda i: (0, 0))

    act_shape = jax.ShapeDtypeStruct((N, L_out, Cout_p), jnp.float32)
    stp_shape = jax.ShapeDtypeStruct((G, 2, Cout_p), jnp.float32)

    # ---- pass A: conv1 (+ projection conv) + per-tile stats ----
    if use_projection:
        in_specs_a = [ph_spec] * n_ph + [w1_spec, wsc_spec]
        out_shape_a = (act_shape, act_shape, stp_shape, stp_shape)
        out_specs_a = (act_spec, act_spec, stp_spec, stp_spec)
        args_a = phases + [w1f, wscf]
    else:
        in_specs_a = [ph_spec] * n_ph + [w1_spec]
        out_shape_a = (act_shape, stp_shape)
        out_specs_a = (act_spec, stp_spec)
        args_a = phases + [w1f]

    res_a = pl.pallas_call(
        _make_conv1_kernel(n_ph, tap_map, L_out, use_projection),
        grid=grid, in_specs=in_specs_a, out_specs=out_specs_a, out_shape=out_shape_a,
        compiler_params=cparams,
    )(*args_a)
    if use_projection:
        y1, sc, st1_part, stsc_part = res_a
    else:
        y1, st1_part = res_a

    a1, c1 = _fold_bn(jnp.sum(st1_part, axis=0), params["g1"], params["b1"], count, Cout_p)

    # ---- pass B: bn1 + relu + conv2 + per-tile stats ----
    y2, st2_part = pl.pallas_call(
        _make_conv2_kernel(L_out),
        grid=grid,
        in_specs=[act_spec, par_spec, par_spec, w2_spec],
        out_specs=(act_spec, stp_spec),
        out_shape=(act_shape, stp_shape),
        compiler_params=cparams,
    )(y1, a1, c1, w2f)

    a2, c2 = _fold_bn(jnp.sum(st2_part, axis=0), params["g2"], params["b2"], count, Cout_p)

    # ---- pass C: bn2 (+ bn_sc) + residual add + relu ----
    if use_projection:
        asc, csc = _fold_bn(jnp.sum(stsc_part, axis=0), params["gsc"], params["bsc"],
                            count, Cout_p)
        out = pl.pallas_call(
            _make_out_kernel(True, L_out),
            grid=grid,
            in_specs=[act_spec, act_spec, par_spec, par_spec, par_spec, par_spec],
            out_specs=act_spec, out_shape=act_shape,
            compiler_params=cparams,
        )(y2, sc, a2, c2, asc, csc)
    else:
        out = pl.pallas_call(
            _make_out_kernel(False, L_out),
            grid=grid,
            in_specs=[act_spec, ph_spec, par_spec, par_spec],
            out_specs=act_spec, out_shape=act_shape,
            compiler_params=cparams,
        )(y2, phases[0], a2, c2)

    # Interface plumbing back to the PyTorch NCL layout (drop channel padding first).
    return jnp.transpose(out[:, :, :Cout], (0, 2, 1))


# --------------------------------------------------------------------------------------
# Pure-JAX reference (mirrors the PyTorch forward in training mode)
# --------------------------------------------------------------------------------------
def ref_forward(x_ncl, params, stride):
    w1, w2 = params["w1"], params["w2"]
    Cout, Cin, _ = w1.shape
    use_projection = (stride != 1) or (Cin != Cout)

    def conv1d(x, w, s, pad):
        return lax.conv_general_dilated(
            x, w, (s,), [(pad, pad)],
            dimension_numbers=("NCH", "OIH", "NCH"), precision=lax.Precision.HIGHEST)

    def bn(x, g, b):
        mu = jnp.mean(x, axis=(0, 2), keepdims=True)
        var = jnp.mean((x - mu) ** 2, axis=(0, 2), keepdims=True)
        return (x - mu) * lax.rsqrt(var + EPS) * g.reshape(1, -1, 1) + b.reshape(1, -1, 1)

    out = jnp.maximum(bn(conv1d(x_ncl, w1, stride, 1), params["g1"], params["b1"]), 0.0)
    out = bn(conv1d(out, w2, 1, 1), params["g2"], params["b2"])
    if use_projection:
        sc = bn(conv1d(x_ncl, params["wsc"], stride, 0), params["gsc"], params["bsc"])
    else:
        sc = x_ncl
    return jnp.maximum(out + sc, 0.0)


# --------------------------------------------------------------------------------------
# Self-test
# --------------------------------------------------------------------------------------
if __name__ == "__main__":
    def make_params(key, cin, cout):
        ks = jax.random.split(key, 9)
        return dict(
            w1=0.2 * jax.random.normal(ks[0], (cout, cin, 3), jnp.float32),
            w2=0.2 * jax.random.normal(ks[1], (cout, cout, 3), jnp.float32),
            wsc=0.2 * jax.random.normal(ks[2], (cout, cin, 1), jnp.float32),
            g1=1.0 + 0.1 * jax.random.normal(ks[3], (cout,), jnp.float32),
            b1=0.1 * jax.random.normal(ks[4], (cout,), jnp.float32),
            g2=1.0 + 0.1 * jax.random.normal(ks[5], (cout,), jnp.float32),
            b2=0.1 * jax.random.normal(ks[6], (cout,), jnp.float32),
            gsc=1.0 + 0.1 * jax.random.normal(ks[7], (cout,), jnp.float32),
            bsc=0.1 * jax.random.normal(ks[8], (cout,), jnp.float32),
        )

    key = jax.random.PRNGKey(0)
    k1, k2, k3, k4 = jax.random.split(key, 4)

    # Case 1: projection shortcut (stride=2, Cin != Cout); n_tile=1 forces a 2-step grid.
    N, Cin, Cout, L, stride = 2, 4, 8, 16, 2
    params = make_params(k1, Cin, Cout)
    x = jax.random.normal(k2, (N, Cin, L), jnp.float32)
    fn = jax.jit(functools.partial(basic_block_1d, stride=stride, n_tile=1))
    out = jax.block_until_ready(fn(x, params))
    ref = ref_forward(x, params, stride)
    assert out.shape == ref.shape == (N, Cout, (L - 1) // stride + 1)
    # bf16 MXU inputs (f32 accumulation) -> tolerance loosened vs. a pure-f32 kernel.
    assert jnp.allclose(out, ref, atol=5e-2, rtol=5e-2), \
        f"projection path max abs err {float(jnp.max(jnp.abs(out - ref)))}"

    # Case 2: identity shortcut (stride=1, Cin == Cout).
    N2, C2, L2 = 2, 8, 16
    params2 = make_params(k3, C2, C2)
    x2 = jax.random.normal(k4, (N2, C2, L2), jnp.float32)
    fn2 = jax.jit(functools.partial(basic_block_1d, stride=1, n_tile=1))
    out2 = jax.block_until_ready(fn2(x2, params2))
    ref2 = ref_forward(x2, params2, 1)
    assert out2.shape == ref2.shape == (N2, C2, L2)
    assert jnp.allclose(out2, ref2, atol=5e-2, rtol=5e-2), \
        f"identity path max abs err {float(jnp.max(jnp.abs(out2 - ref2)))}"

    print("KERNEL_OK")
</pallas_src>

<mosaic_0001>
module attributes {stable_mosaic.version = 11 : i64} {
  func.func @kernel(%arg0: i32, %arg1: memref<1x9x128xf32, #tpu.memory_space<vmem>>, %arg2: memref<1x9x128xf32, #tpu.memory_space<vmem>>, %arg3: memref<384x128xbf16, #tpu.memory_space<vmem>>, %arg4: memref<128x128xbf16, #tpu.memory_space<vmem>>, %arg5: memref<1x8x128xf32, #tpu.memory_space<vmem>>, %arg6: memref<1x8x128xf32, #tpu.memory_space<vmem>>, %arg7: memref<1x2x128xf32, #tpu.memory_space<vmem>>, %arg8: memref<1x2x128xf32, #tpu.memory_space<vmem>>) attributes {dimension_semantics = [#tpu.dimension_semantics<parallel>], iteration_bounds = array<i64: 2>, scalar_prefetch = 0 : i64, scratch_operands = 0 : i64, tpu.core_type = #tpu.core_type<tc>, window_params = [{transform_indices = @transform_0, window_bounds = array<i64: 1, 9, 128>}, {transform_indices = @transform_1, window_bounds = array<i64: 1, 9, 128>}, {pipeline_mode = #tpu.pipeline_mode<synchronous>, transform_indices = @transform_2, window_bounds = array<i64: 384, 128>}, {pipeline_mode = #tpu.pipeline_mode<synchronous>, transform_indices = @transform_3, window_bounds = array<i64: 128, 128>}, {transform_indices = @transform_4, window_bounds = array<i64: 1, 8, 128>}, {transform_indices = @transform_5, window_bounds = array<i64: 1, 8, 128>}, {transform_indices = @transform_6, window_bounds = array<i64: 1, 2, 128>}, {transform_indices = @transform_7, window_bounds = array<i64: 1, 2, 128>}]} {
    %c0 = arith.constant 0 : index
    %c0_0 = arith.constant 0 : index
    %c0_1 = arith.constant 0 : index
    %0 = vector.load %arg1[%c0, %c0_0, %c0_1] : memref<1x9x128xf32, #tpu.memory_space<vmem>>, vector<1x8x128xf32>
    %c0_2 = arith.constant 0 : index
    %c0_3 = arith.constant 0 : index
    %c0_4 = arith.constant 0 : index
    %1 = vector.load %arg2[%c0_2, %c0_3, %c0_4] : memref<1x9x128xf32, #tpu.memory_space<vmem>>, vector<1x8x128xf32>
    %c0_5 = arith.constant 0 : index
    %c1 = arith.constant 1 : index
    %c0_6 = arith.constant 0 : index
    %2 = vector.load %arg1[%c0_5, %c1, %c0_6] : memref<1x9x128xf32, #tpu.memory_space<vmem>>, vector<1x8x128xf32>
    %3 = tpu.concatenate %0, %1, %2 in 2 : vector<1x8x128xf32>, vector<1x8x128xf32>, vector<1x8x128xf32> -> vector<1x8x384xf32>
    %4 = arith.truncf %3 : vector<1x8x384xf32> to vector<1x8x384xbf16>
    %5 = vector.shape_cast %4 : vector<1x8x384xbf16> to vector<8x384xbf16>
    %c0_7 = arith.constant 0 : index
    %c0_8 = arith.constant 0 : index
    %6 = vector.load %arg3[%c0_7, %c0_8] : memref<384x128xbf16, #tpu.memory_space<vmem>>, vector<384x128xbf16>
    %cst = arith.constant dense<0.000000e+00> : vector<8x128xf32>
    %7 = tpu.matmul %5, %6, %cst {dimension_numbers = #tpu.dot_dimension_numbers<[1], [0], [0], [1], [0, 0, 1, 1], [], []>} : vector<8x384xbf16>, vector<384x128xbf16>, vector<8x128xf32> -> vector<8x128xf32>
    %8 = vector.shape_cast %7 : vector<8x128xf32> to vector<1x8x128xf32>
    %c0_9 = arith.constant 0 : index
    %c0_10 = arith.constant 0 : index
    %c0_11 = arith.constant 0 : index
    %9 = vector.load %arg5[%c0_9, %c0_10, %c0_11] : memref<1x8x128xf32, #tpu.memory_space<vmem>>, vector<1x8x128xf32>
    tpu.vector_store %arg5[%c0_9, %c0_10, %c0_11], %8 {strides = array<i32>} : memref<1x8x128xf32, #tpu.memory_space<vmem>>, vector<1x8x128xf32>,
    %cst_12 = arith.constant dense<0.000000e+00> : vector<128xf32>
    %10 = vector.multi_reduction <add>, %7, %cst_12 [0] : vector<8x128xf32> to vector<128xf32>
    %11 = vector.shape_cast %10 : vector<128xf32> to vector<1x128xf32>
    %12 = arith.mulf %7, %7 : vector<8x128xf32>
    %cst_13 = arith.constant dense<0.000000e+00> : vector<128xf32>
    %13 = vector.multi_reduction <add>, %12, %cst_13 [0] : vector<8x128xf32> to vector<128xf32>
    %14 = vector.shape_cast %13 : vector<128xf32> to vector<1x128xf32>
    %15 = tpu.concatenate %11, %14 in 0 : vector<1x128xf32>, vector<1x128xf32> -> vector<2x128xf32>
    %16 = vector.shape_cast %15 : vector<2x128xf32> to vector<1x2x128xf32>
    %c0_14 = arith.constant 0 : index
    %c0_15 = arith.constant 0 : index
    %c0_16 = arith.constant 0 : index
    %17 = vector.load %arg7[%c0_14, %c0_15, %c0_16] : memref<1x2x128xf32, #tpu.memory_space<vmem>>, vector<1x2x128xf32>
    tpu.vector_store %arg7[%c0_14, %c0_15, %c0_16], %16 {strides = array<i32>} : memref<1x2x128xf32, #tpu.memory_space<vmem>>, vector<1x2x128xf32>,
    %18 = arith.truncf %1 : vector<1x8x128xf32> to vector<1x8x128xbf16>
    %19 = vector.shape_cast %18 : vector<1x8x128xbf16> to vector<8x128xbf16>
    %c0_17 = arith.constant 0 : index
    %c0_18 = arith.constant 0 : index
    %20 = vector.load %arg4[%c0_17, %c0_18] : memref<128x128xbf16, #tpu.memory_space<vmem>>, vector<128x128xbf16>
    %cst_19 = arith.constant dense<0.000000e+00> : vector<8x128xf32>
    %21 = tpu.matmul %19, %20, %cst_19 {dimension_numbers = #tpu.dot_dimension_numbers<[1], [0], [0], [1], [0, 0, 1, 1], [], []>} : vector<8x128xbf16>, vector<128x128xbf16>, vector<8x128xf32> -> vector<8x128xf32>
    %22 = vector.shape_cast %21 : vector<8x128xf32> to vector<1x8x128xf32>
    %c0_20 = arith.constant 0 : index
    %c0_21 = arith.constant 0 : index
    %c0_22 = arith.constant 0 : index
    %23 = vector.load %arg6[%c0_20, %c0_21, %c0_22] : memref<1x8x128xf32, #tpu.memory_space<vmem>>, vector<1x8x128xf32>
    tpu.vector_store %arg6[%c0_20, %c0_21, %c0_22], %22 {strides = array<i32>} : memref<1x8x128xf32, #tpu.memory_space<vmem>>, vector<1x8x128xf32>,
    %cst_23 = arith.constant dense<0.000000e+00> : vector<128xf32>
    %24 = vector.multi_reduction <add>, %21, %cst_23 [0] : vector<8x128xf32> to vector<128xf32>
    %25 = vector.shape_cast %24 : vector<128xf32> to vector<1x128xf32>
    %26 = arith.mulf %21, %21 : vector<8x128xf32>
    %cst_24 = arith.constant dense<0.000000e+00> : vector<128xf32>
    %27 = vector.multi_reduction <add>, %26, %cst_24 [0] : vector<8x128xf32> to vector<128xf32>
    %28 = vector.shape_cast %27 : vector<128xf32> to vector<1x128xf32>
    %29 = tpu.concatenate %25, %28 in 0 : vector<1x128xf32>, vector<1x128xf32> -> vector<2x128xf32>
    %30 = vector.shape_cast %29 : vector<2x128xf32> to vector<1x2x128xf32>
    %c0_25 = arith.constant 0 : index
    %c0_26 = arith.constant 0 : index
    %c0_27 = arith.constant 0 : index
    %31 = vector.load %arg8[%c0_25, %c0_26, %c0_27] : memref<1x2x128xf32, #tpu.memory_space<vmem>>, vector<1x2x128xf32>
    tpu.vector_store %arg8[%c0_25, %c0_26, %c0_27], %30 {strides = array<i32>} : memref<1x2x128xf32, #tpu.memory_space<vmem>>, vector<1x2x128xf32>,
    return
  }
  func.func @transform_0(%arg0: i32) -> (i32, i32, i32) {
    %c0_i32 = arith.constant 0 : i32
    %c0_i32_0 = arith.constant 0 : i32
    %c0_i32_1 = arith.constant 0 : i32
    return %arg0, %c0_i32, %c0_i32_0 : i32, i32, i32
  }
  func.func @transform_1(%arg0: i32) -> (i32, i32, i32) {
    %c0_i32 = arith.constant 0 : i32
    %c0_i32_0 = arith.constant 0 : i32
    %c0_i32_1 = arith.constant 0 : i32
    return %arg0, %c0_i32, %c0_i32_0 : i32, i32, i32
  }
  func.func @transform_2(%arg0: i32) -> (i32, i32) {
    %c0_i32 = arith.constant 0 : i32
    %c0_i32_0 = arith.constant 0 : i32
    %c0_i32_1 = arith.constant 0 : i32
    return %c0_i32, %c0_i32_0 : i32, i32
  }
  func.func @transform_3(%arg0: i32) -> (i32, i32) {
    %c0_i32 = arith.constant 0 : i32
    %c0_i32_0 = arith.constant 0 : i32
    %c0_i32_1 = arith.constant 0 : i32
    return %c0_i32, %c0_i32_0 : i32, i32
  }
  func.func @transform_4(%arg0: i32) -> (i32, i32, i32) {
    %c0_i32 = arith.constant 0 : i32
    %c0_i32_0 = arith.constant 0 : i32
    %c0_i32_1 = arith.constant 0 : i32
    return %arg0, %c0_i32, %c0_i32_0 : i32, i32, i32
  }
  func.func @transform_5(%arg0: i32) -> (i32, i32, i32) {
    %c0_i32 = arith.constant 0 : i32
    %c0_i32_0 = arith.constant 0 : i32
    %c0_i32_1 = arith.constant 0 : i32
    return %arg0, %c0_i32, %c0_i32_0 : i32, i32, i32
  }
  func.func @transform_6(%arg0: i32) -> (i32, i32, i32) {
    %c0_i32 = arith.constant 0 : i32
    %c0_i32_0 = arith.constant 0 : i32
    %c0_i32_1 = arith.constant 0 : i32
    return %arg0, %c0_i32, %c0_i32_0 : i32, i32, i32
  }
  func.func @transform_7(%arg0: i32) -> (i32, i32, i32) {
    %c0_i32 = arith.constant 0 : i32
    %c0_i32_0 = arith.constant 0 : i32
    %c0_i32_1 = arith.constant 0 : i32
    return %arg0, %c0_i32, %c0_i32_0 : i32, i32, i32
  }
}

module attributes {stable_mosaic.version = 11 : i64} {
  func.func @kernel(%arg0: i32, %arg1: memref<1x8x128xf32, #tpu.memory_space<vmem>>, %arg2: memref<1x1x128xf32, #tpu.memory_space<vmem>>, %arg3: memref<1x1x128xf32, #tpu.memory_space<vmem>>, %arg4: memref<384x128xbf16, #tpu.memory_space<vmem>>, %arg5: memref<1x8x128xf32, #tpu.memory_space<vmem>>, %arg6: memref<1x2x128xf32, #tpu.memory_space<vmem>>) attributes {dimension_semantics = [#tpu.dimension_semantics<parallel>], iteration_bounds = array<i64: 2>, scalar_prefetch = 0 : i64, scratch_operands = 0 : i64, tpu.core_type = #tpu.core_type<tc>, window_params = [{transform_indices = @transform_0, window_bounds = array<i64: 1, 8, 128>}, {pipeline_mode = #tpu.pipeline_mode<synchronous>, transform_indices = @transform_1, window_bounds = array<i64: 1, 1, 128>}, {pipeline_mode = #tpu.pipeline_mode<synchronous>, transform_indices = @transform_2, window_bounds = array<i64: 1, 1, 128>}, {pipeline_mode = #tpu.pipeline_mode<synchronous>, transform_indices = @transform_3, window_bounds = array<i64: 384, 128>}, {transform_indices = @transform_4, window_bounds = array<i64: 1, 8, 128>}, {transform_indices = @transform_5, window_bounds = array<i64: 1, 2, 128>}]} {
    %c0 = arith.constant 0 : index
    %c0_0 = arith.constant 0 : index
    %c0_1 = arith.constant 0 : index
    %0 = vector.load %arg1[%c0, %c0_0, %c0_1] : memref<1x8x128xf32, #tpu.memory_space<vmem>>, vector<1x8x128xf32>
    %c0_2 = arith.constant 0 : index
    %c0_3 = arith.constant 0 : index
    %c0_4 = arith.constant 0 : index
    %1 = vector.load %arg2[%c0_2, %c0_3, %c0_4] : memref<1x1x128xf32, #tpu.memory_space<vmem>>, vector<1x1x128xf32>
    %2 = vector.broadcast %1 : vector<1x1x128xf32> to vector<1x8x128xf32>
    %3 = arith.mulf %0, %2 : vector<1x8x128xf32>
    %c0_5 = arith.constant 0 : index
    %c0_6 = arith.constant 0 : index
    %c0_7 = arith.constant 0 : index
    %4 = vector.load %arg3[%c0_5, %c0_6, %c0_7] : memref<1x1x128xf32, #tpu.memory_space<vmem>>, vector<1x1x128xf32>
    %5 = vector.broadcast %4 : vector<1x1x128xf32> to vector<1x8x128xf32>
    %6 = arith.addf %3, %5 : vector<1x8x128xf32>
    %cst = arith.constant 0.000000e+00 : f32
    %7 = vector.broadcast %cst : f32 to vector<1x8x128xf32>
    %8 = arith.maximumf %6, %7 : vector<1x8x128xf32>
    %cst_8 = arith.constant 0.000000e+00 : f32
    %9 = vector.broadcast %cst_8 : f32 to vector<1x1x128xf32>
    %10 = vector.extract_strided_slice %8 {offsets = [0, 0, 0], sizes = [1, 7, 128], strides = [1, 1, 1]} : vector<1x8x128xf32> to vector<1x7x128xf32>
    %11 = tpu.concatenate %9, %10 in 1 : vector<1x1x128xf32>, vector<1x7x128xf32> -> vector<1x8x128xf32>
    %12 = vector.extract_strided_slice %8 {offsets = [0, 1, 0], sizes = [1, 7, 128], strides = [1, 1, 1]} : vector<1x8x128xf32> to vector<1x7x128xf32>
    %13 = tpu.concatenate %12, %9 in 1 : vector<1x7x128xf32>, vector<1x1x128xf32> -> vector<1x8x128xf32>
    %14 = tpu.concatenate %11, %8, %13 in 2 : vector<1x8x128xf32>, vector<1x8x128xf32>, vector<1x8x128xf32> -> vector<1x8x384xf32>
    %15 = arith.truncf %14 : vector<1x8x384xf32> to vector<1x8x384xbf16>
    %16 = vector.shape_cast %15 : vector<1x8x384xbf16> to vector<8x384xbf16>
    %c0_9 = arith.constant 0 : index
    %c0_10 = arith.constant 0 : index
    %17 = vector.load %arg4[%c0_9, %c0_10] : memref<384x128xbf16, #tpu.memory_space<vmem>>, vector<384x128xbf16>
    %cst_11 = arith.constant dense<0.000000e+00> : vector<8x128xf32>
    %18 = tpu.matmul %16, %17, %cst_11 {dimension_numbers = #tpu.dot_dimension_numbers<[1], [0], [0], [1], [0, 0, 1, 1], [], []>} : vector<8x384xbf16>, vector<384x128xbf16>, vector<8x128xf32> -> vector<8x128xf32>
    %19 = vector.shape_cast %18 : vector<8x128xf32> to vector<1x8x128xf32>
    %c0_12 = arith.constant 0 : index
    %c0_13 = arith.constant 0 : index
    %c0_14 = arith.constant 0 : index
    %20 = vector.load %arg5[%c0_12, %c0_13, %c0_14] : memref<1x8x128xf32, #tpu.memory_space<vmem>>, vector<1x8x128xf32>
    tpu.vector_store %arg5[%c0_12, %c0_13, %c0_14], %19 {strides = array<i32>} : memref<1x8x128xf32, #tpu.memory_space<vmem>>, vector<1x8x128xf32>,
    %cst_15 = arith.constant dense<0.000000e+00> : vector<128xf32>
    %21 = vector.multi_reduction <add>, %18, %cst_15 [0] : vector<8x128xf32> to vector<128xf32>
    %22 = vector.shape_cast %21 : vector<128xf32> to vector<1x128xf32>
    %23 = arith.mulf %18, %18 : vector<8x128xf32>
    %cst_16 = arith.constant dense<0.000000e+00> : vector<128xf32>
    %24 = vector.multi_reduction <add>, %23, %cst_16 [0] : vector<8x128xf32> to vector<128xf32>
    %25 = vector.shape_cast %24 : vector<128xf32> to vector<1x128xf32>
    %26 = tpu.concatenate %22, %25 in 0 : vector<1x128xf32>, vector<1x128xf32> -> vector<2x128xf32>
    %27 = vector.shape_cast %26 : vector<2x128xf32> to vector<1x2x128xf32>
    %c0_17 = arith.constant 0 : index
    %c0_18 = arith.constant 0 : index
    %c0_19 = arith.constant 0 : index
    %28 = vector.load %arg6[%c0_17, %c0_18, %c0_19] : memref<1x2x128xf32, #tpu.memory_space<vmem>>, vector<1x2x128xf32>
    tpu.vector_store %arg6[%c0_17, %c0_18, %c0_19], %27 {strides = array<i32>} : memref<1x2x128xf32, #tpu.memory_space<vmem>>, vector<1x2x128xf32>,
    return
  }
  func.func @transform_0(%arg0: i32) -> (i32, i32, i32) {
    %c0_i32 = arith.constant 0 : i32
    %c0_i32_0 = arith.constant 0 : i32
    %c0_i32_1 = arith.constant 0 : i32
    return %arg0, %c0_i32, %c0_i32_0 : i32, i32, i32
  }
  func.func @transform_1(%arg0: i32) -> (i32, i32, i32) {
    %c0_i32 = arith.constant 0 : i32
    %c0_i32_0 = arith.constant 0 : i32
    %c0_i32_1 = arith.constant 0 : i32
    %c0_i32_2 = arith.constant 0 : i32
    return %c0_i32, %c0_i32_0, %c0_i32_1 : i32, i32, i32
  }
  func.func @transform_2(%arg0: i32) -> (i32, i32, i32) {
    %c0_i32 = arith.constant 0 : i32
    %c0_i32_0 = arith.constant 0 : i32
    %c0_i32_1 = arith.constant 0 : i32
    %c0_i32_2 = arith.constant 0 : i32
    return %c0_i32, %c0_i32_0, %c0_i32_1 : i32, i32, i32
  }
  func.func @transform_3(%arg0: i32) -> (i32, i32) {
    %c0_i32 = arith.constant 0 : i32
    %c0_i32_0 = arith.constant 0 : i32
    %c0_i32_1 = arith.constant 0 : i32
    return %c0_i32, %c0_i32_0 : i32, i32
  }
  func.func @transform_4(%arg0: i32) -> (i32, i32, i32) {
    %c0_i32 = arith.constant 0 : i32
    %c0_i32_0 = arith.constant 0 : i32
    %c0_i32_1 = arith.constant 0 : i32
    return %arg0, %c0_i32, %c0_i32_0 : i32, i32, i32
  }
  func.func @transform_5(%arg0: i32) -> (i32, i32, i32) {
    %c0_i32 = arith.constant 0 : i32
    %c0_i32_0 = arith.constant 0 : i32
    %c0_i32_1 = arith.constant 0 : i32
    return %arg0, %c0_i32, %c0_i32_0 : i32, i32, i32
  }
}

module attributes {stable_mosaic.version = 11 : i64} {
  func.func @kernel(%arg0: i32, %arg1: memref<1x8x128xf32, #tpu.memory_space<vmem>>, %arg2: memref<1x8x128xf32, #tpu.memory_space<vmem>>, %arg3: memref<1x1x128xf32, #tpu.memory_space<vmem>>, %arg4: memref<1x1x128xf32, #tpu.memory_space<vmem>>, %arg5: memref<1x1x128xf32, #tpu.memory_space<vmem>>, %arg6: memref<1x1x128xf32, #tpu.memory_space<vmem>>, %arg7: memref<1x8x128xf32, #tpu.memory_space<vmem>>) attributes {dimension_semantics = [#tpu.dimension_semantics<parallel>], iteration_bounds = array<i64: 2>, scalar_prefetch = 0 : i64, scratch_operands = 0 : i64, tpu.core_type = #tpu.core_type<tc>, window_params = [{transform_indices = @transform_0, window_bounds = array<i64: 1, 8, 128>}, {transform_indices = @transform_1, window_bounds = array<i64: 1, 8, 128>}, {pipeline_mode = #tpu.pipeline_mode<synchronous>, transform_indices = @transform_2, window_bounds = array<i64: 1, 1, 128>}, {pipeline_mode = #tpu.pipeline_mode<synchronous>, transform_indices = @transform_3, window_bounds = array<i64: 1, 1, 128>}, {pipeline_mode = #tpu.pipeline_mode<synchronous>, transform_indices = @transform_4, window_bounds = array<i64: 1, 1, 128>}, {pipeline_mode = #tpu.pipeline_mode<synchronous>, transform_indices = @transform_5, window_bounds = array<i64: 1, 1, 128>}, {transform_indices = @transform_6, window_bounds = array<i64: 1, 8, 128>}]} {
    %c0 = arith.constant 0 : index
    %c0_0 = arith.constant 0 : index
    %c0_1 = arith.constant 0 : index
    %0 = vector.load %arg1[%c0, %c0_0, %c0_1] : memref<1x8x128xf32, #tpu.memory_space<vmem>>, vector<1x8x128xf32>
    %c0_2 = arith.constant 0 : index
    %c0_3 = arith.constant 0 : index
    %c0_4 = arith.constant 0 : index
    %1 = vector.load %arg3[%c0_2, %c0_3, %c0_4] : memref<1x1x128xf32, #tpu.memory_space<vmem>>, vector<1x1x128xf32>
    %2 = vector.broadcast %1 : vector<1x1x128xf32> to vector<1x8x128xf32>
    %3 = arith.mulf %0, %2 : vector<1x8x128xf32>
    %c0_5 = arith.constant 0 : index
    %c0_6 = arith.constant 0 : index
    %c0_7 = arith.constant 0 : index
    %4 = vector.load %arg4[%c0_5, %c0_6, %c0_7] : memref<1x1x128xf32, #tpu.memory_space<vmem>>, vector<1x1x128xf32>
    %5 = vector.broadcast %4 : vector<1x1x128xf32> to vector<1x8x128xf32>
    %6 = arith.addf %3, %5 : vector<1x8x128xf32>
    %c0_8 = arith.constant 0 : index
    %c0_9 = arith.constant 0 : index
    %c0_10 = arith.constant 0 : index
    %7 = vector.load %arg2[%c0_8, %c0_9, %c0_10] : memref<1x8x128xf32, #tpu.memory_space<vmem>>, vector<1x8x128xf32>
    %c0_11 = arith.constant 0 : index
    %c0_12 = arith.constant 0 : index
    %c0_13 = arith.constant 0 : index
    %8 = vector.load %arg5[%c0_11, %c0_12, %c0_13] : memref<1x1x128xf32, #tpu.memory_space<vmem>>, vector<1x1x128xf32>
    %9 = vector.broadcast %8 : vector<1x1x128xf32> to vector<1x8x128xf32>
    %10 = arith.mulf %7, %9 : vector<1x8x128xf32>
    %c0_14 = arith.constant 0 : index
    %c0_15 = arith.constant 0 : index
    %c0_16 = arith.constant 0 : index
    %11 = vector.load %arg6[%c0_14, %c0_15, %c0_16] : memref<1x1x128xf32, #tpu.memory_space<vmem>>, vector<1x1x128xf32>
    %12 = vector.broadcast %11 : vector<1x1x128xf32> to vector<1x8x128xf32>
    %13 = arith.addf %10, %12 : vector<1x8x128xf32>
    %14 = arith.addf %6, %13 : vector<1x8x128xf32>
    %cst = arith.constant 0.000000e+00 : f32
    %15 = vector.broadcast %cst : f32 to vector<1x8x128xf32>
    %16 = arith.maximumf %14, %15 : vector<1x8x128xf32>
    %c0_17 = arith.constant 0 : index
    %c0_18 = arith.constant 0 : index
    %c0_19 = arith.constant 0 : index
    %17 = vector.load %arg7[%c0_17, %c0_18, %c0_19] : memref<1x8x128xf32, #tpu.memory_space<vmem>>, vector<1x8x128xf32>
    tpu.vector_store %arg7[%c0_17, %c0_18, %c0_19], %16 {strides = array<i32>} : memref<1x8x128xf32, #tpu.memory_space<vmem>>, vector<1x8x128xf32>,
    return
  }
  func.func @transform_0(%arg0: i32) -> (i32, i32, i32) {
    %c0_i32 = arith.constant 0 : i32
    %c0_i32_0 = arith.constant 0 : i32
    %c0_i32_1 = arith.constant 0 : i32
    return %arg0, %c0_i32, %c0_i32_0 : i32, i32, i32
  }
  func.func @transform_1(%arg0: i32) -> (i32, i32, i32) {
    %c0_i32 = arith.constant 0 : i32
    %c0_i32_0 = arith.constant 0 : i32
    %c0_i32_1 = arith.constant 0 : i32
    return %arg0, %c0_i32, %c0_i32_0 : i32, i32, i32
  }
  func.func @transform_2(%arg0: i32) -> (i32, i32, i32) {
    %c0_i32 = arith.constant 0 : i32
    %c0_i32_0 = arith.constant 0 : i32
    %c0_i32_1 = arith.constant 0 : i32
    %c0_i32_2 = arith.constant 0 : i32
    return %c0_i32, %c0_i32_0, %c0_i32_1 : i32, i32, i32
  }
  func.func @transform_3(%arg0: i32) -> (i32, i32, i32) {
    %c0_i32 = arith.constant 0 : i32
    %c0_i32_0 = arith.constant 0 : i32
    %c0_i32_1 = arith.constant 0 : i32
    %c0_i32_2 = arith.constant 0 : i32
    return %c0_i32, %c0_i32_0, %c0_i32_1 : i32, i32, i32
  }
  func.func @transform_4(%arg0: i32) -> (i32, i32, i32) {
    %c0_i32 = arith.constant 0 : i32
    %c0_i32_0 = arith.constant 0 : i32
    %c0_i32_1 = arith.constant 0 : i32
    %c0_i32_2 = arith.constant 0 : i32
    return %c0_i32, %c0_i32_0, %c0_i32_1 : i32, i32, i32
  }
  func.func @transform_5(%arg0: i32) -> (i32, i32, i32) {
    %c0_i32 = arith.constant 0 : i32
    %c0_i32_0 = arith.constant 0 : i32
    %c0_i32_1 = arith.constant 0 : i32
    %c0_i32_2 = arith.constant 0 : i32
    return %c0_i32, %c0_i32_0, %c0_i32_1 : i32, i32, i32
  }
  func.func @transform_6(%arg0: i32) -> (i32, i32, i32) {
    %c0_i32 = arith.constant 0 : i32
    %c0_i32_0 = arith.constant 0 : i32
    %c0_i32_1 = arith.constant 0 : i32
    return %arg0, %c0_i32, %c0_i32_0 : i32, i32, i32
  }
}

</mosaic_0001>

<bundles_post_ra>
// kernel: basic_block_1d.5
= control target key start
LH: loop header
LB: loop body
LE: loop exit
PB: predicated region body
PF: predicated region fallthrough
CT: control target
= control target key end

     0   :  { %s431_s21 = smov 0   ;;  %s457_s0 = inlined_call_operand.vmem [shape: f32[2,8,128], index: 0, kind: input, shape index: {}]   ;;  %s458_s1 = inlined_call_operand.vmem [shape: f32[2,8,128], index: 1, kind: input, shape index: {}]   ;;  %s459_s2 = inlined_call_operand.vmem [shape: f32[1,1,128], index: 2, kind: input, shape index: {}]   ;;  %s460_s3 = inlined_call_operand.vmem [shape: f32[1,1,128], index: 3, kind: input, shape index: {}]   ;;  %s461_s4 = inlined_call_operand.vmem [shape: f32[1,1,128], index: 4, kind: input, shape index: {}]   ;;  %s462_s5 = inlined_call_operand.vmem [shape: f32[1,1,128], index: 5, kind: input, shape index: {}]   ;;  %s463_s6 = inlined_call_operand.vmem [shape: f32[2,8,128], index: 6, kind: output, shape index: {}]  }
   0x1 LB: > { %s366_s22 = sadd.s32 4294967295, %s394_s21   ;;  %p370_p0 = scmp.ge.s32.totalorder %s394_s21, 1  ;;  %s394_s21 = sphi %s431_s21, %s16_s21  }
   0x2   : > { %p220_p1 = scmp.lt.s32.totalorder %s394_s21, 3 }
   0x4   : > { %p221_p2 = pnand %p370_p0, %p220_p1 }
   0x5   : > { %p252_p3 = scmp.lt.s32.totalorder (!%p221_p2), %s366_s22, 1 }
   0x6   : > { %224 = sbr.rel (%p221_p2) target bundleno = 25 (0x19), region = 44 }
   0xb   : > { %s465_s22 = smov (!%p252_p3, %s366_s22), 1  ;;  %v374_v0 = vld [vmem:[%s459_s2] ss:$0 sm:$0xff] }
   0xc   : > { %s371_s23 = sshll.u32 %s465_s22, 3  ;;  %v376_v1 = vld [vmem:[%s461_s4] ss:$0 sm:$0xff] }
   0xd   : > { %s255_s30 = scalar_lea.vmem %s457_s0, %s371_s23  ;;  %s259_s9 = scalar_lea.vmem %s458_s1, %s371_s23  ;;  %v375_v2 = vld [vmem:[%s460_s3] ss:$0 sm:$0xff] }
   0xe   : > { %v264_v3 = vld [vmem:[%s255_s30] sm:$0xff]  ;;  %s263_s16 = scalar_lea.vmem %s463_s6, %s371_s23 }
   0xf   : > { %v281_v4 = vld [vmem:[%s259_s9] sm:$0xff]  ;;  %v272_v6 = vmul.f32 %v374_v0, %v264_v3 }
  0x10   : > { %v377_v5 = vld [vmem:[%s462_s5] ss:$0 sm:$0xff]  ;;  %v289_v7 = vmul.f32 %v376_v1, %v281_v4 }
  0x11   : > { %v280_v8 = vadd.f32 %v375_v2, %v272_v6 }
  0x12   : > { %v297_v9 = vadd.f32 %v377_v5, %v289_v7 }
  0x14   : > { %v298_v10 = vadd.f32 %v297_v9, %v280_v8 }
  0x16   : > { %v299_v11 = vmax.f32 %v298_v10, 0.0 }
  0x18   : > { %300 = vst [vmem:[%s263_s16] sm:$0xff] %v299_v11 }
  0x19 PF: > { %s16_s21 = sadd.s32 1, %s394_s21  }
  0x1a   : > { %p13_p4 = scmp.ge.s32.totalorder %s16_s21, 4  }
  0x1c   :  { %15 = sbr.rel (!%p13_p4) target bundleno = 1 (0x1), region = 77 }

// kernel: basic_block_1d.4
= control target key start
LH: loop header
LB: loop body
LE: loop exit
PB: predicated region body
PF: predicated region fallthrough
CT: control target
= control target key end

     0   :  { %s803_s18 = smov 0   ;;  %s915_s0 = inlined_call_operand.vmem [shape: f32[2,8,128], index: 0, kind: input, shape index: {}]   ;;  %s916_s1 = inlined_call_operand.vmem [shape: f32[1,1,128], index: 1, kind: input, shape index: {}]   ;;  %s917_s2 = inlined_call_operand.vmem [shape: f32[1,1,128], index: 2, kind: input, shape index: {}]   ;;  %s918_s3 = inlined_call_operand.vmem [shape: bf16[384,128], index: 3, kind: input, shape index: {}]   ;;  %s919_s4 = inlined_call_operand.vmem [shape: f32[2,8,128], index: 4, kind: output, shape index: {0}]   ;;  %s920_s5 = inlined_call_operand.vmem [shape: f32[2,2,128], index: 5, kind: output, shape index: {1}]  }
   0x1 LB: > { %s634_s19 = sadd.s32 4294967295, %s769_s18   ;;  %p638_p0 = scmp.ge.s32.totalorder %s769_s18, 1  ;;  %s769_s18 = sphi %s803_s18, %s16_s18  }
   0x2   : > { %p189_p1 = scmp.lt.s32.totalorder %s769_s18, 3 }
   0x4   : > { %p190_p2 = pnand %p638_p0, %p189_p1 }
   0x5   : > { %p219_p3 = scmp.lt.s32.totalorder (!%p190_p2), %s634_s19, 1 }
   0x6   : > { %193 = sbr.rel (%p190_p2) target bundleno = 260 (0x104), region = 36 }
   0xb   : > { %v739_v0 = vld [vmem:[%s918_s3 + $0x78] sm:$0xff]   ;;  %v771_v1 = vmov 0.0   ;;  %vm772_vm0 = vmmov 0   ;;  %v742_v4 = vld [vmem:[%s918_s3 + $0x70] sm:$0xff]   ;;  %v745_v7 = vld [vmem:[%s918_s3 + $0x68] sm:$0xff]   ;;  %s922_s19 = smov (!%p219_p3, %s634_s19), 1 }
   0xc   : > { %709 = vmatprep.subr.bf16.mxu1 %v771_v1  ;;  %v740_v2 = vld [vmem:[%s918_s3 + $0xb8] sm:$0xff]   ;;  %678 = vmatprep.subr.bf16.mxu0 %v739_v0  ;;  %v743_v5 = vld [vmem:[%s918_s3 + $0xb0] sm:$0xff]   ;;  %v746_v8 = vld [vmem:[%s918_s3 + $0xa8] sm:$0xff]   ;;  %s639_s29 = sshll.u32 %s922_s19, 3  ;;  %vm253_vm1 = vcmask 1040384   ;;  %vm257_vm2 = vcmask 1046528  }
   0xd   : > { %v741_v3 = vld [vmem:[%s918_s3 + $0x38] sm:$0xff]   ;;  %725 = vmatprep.mubr.msk.bf16.mxu1 %vm772_vm0, %v771_v1  ;;  %710 = vmatpush3.bf16.msra.mxu1 %v740_v2  ;;  %v744_v6 = vld [vmem:[%s918_s3 + $0x30] sm:$0xff]   ;;  %v747_v9 = vld [vmem:[%s918_s3 + $0x28] sm:$0xff]   ;;  %s222_s13 = scalar_lea.vmem %s915_s0, %s639_s29  ;;  %s226_s8 = scalar_lea.vmem %s919_s4, %s639_s29 }
   0xe   : > { %679 = vmatpush3.bf16.msra.mxu0 %v741_v3  ;;  %711 = vmatprep.subr.bf16.mxu1 %v771_v1  ;;  %v748_v10 = vld [vmem:[%s918_s3 + $0x60] sm:$0xff]   ;;  %v751_v13 = vld [vmem:[%s918_s3 + $0x58] sm:$0xff]   ;;  %v754_v16 = vld [vmem:[%s918_s3 + $0x50] sm:$0xff]   ;;  %s641_s9 = sshll.u32 %s922_s19, 1 }
   0xf   : > { %680 = vmatprep.subr.bf16.mxu0 %v742_v4  ;;  %v749_v11 = vld [vmem:[%s918_s3 + $0xa0] sm:$0xff]   ;;  %v752_v14 = vld [vmem:[%s918_s3 + $0x98] sm:$0xff]   ;;  %v755_v17 = vld [vmem:[%s918_s3 + $0x90] sm:$0xff]   ;;  %s230_s11 = scalar_lea.vmem %s920_s5, %s641_s9 }
  0x10   : > { %v750_v12 = vld [vmem:[%s918_s3 + $0x20] sm:$0xff]   ;;  %v753_v15 = vld [vmem:[%s918_s3 + $0x18] sm:$0xff]   ;;  %v756_v18 = vld [vmem:[%s918_s3 + $0x10] sm:$0xff]  }
  0x11   : > { %712 = vmatpush3.bf16.msra.mxu1 %v743_v5  ;;  %v757_v19 = vld [vmem:[%s918_s3 + $0x48] sm:$0xff]   ;;  %v232_v22 = vld [vmem:[%s222_s13] sm:$0xff]  ;;  %vm668_vm3 = vmneg %vm253_vm1 }
  0x12   : > { %681 = vmatpush3.bf16.msra.mxu0 %v744_v6  ;;  %713 = vmatprep.subr.bf16.mxu1 %v771_v1  ;;  %v758_v20 = vld [vmem:[%s918_s3 + $0x88] sm:$0xff]   ;;  %v642_v23 = vld [vmem:[%s916_s1] ss:$0 sm:$0xff]  ;;  %vm673_vm4 = vmpackc.low %vm257_vm2, %vm257_vm2 }
  0x13   : > { %682 = vmatprep.subr.bf16.mxu0 %v745_v7  ;;  %v759_v21 = vld [vmem:[%s918_s3 + $0x8] sm:$0xff]   ;;  %v643_v24 = vld [vmem:[%s917_s2] ss:$0 sm:$0xff]  ;;  %v240_v26 = vmul.f32 %v642_v23, %v232_v22  ;;  %vm670_vm5 = vmpackc.low %vm668_vm3, %vm668_vm3 }
  0x14   : > { %v760_v25 = vld [vmem:[%s918_s3 + $0x40] sm:$0xff]  }
  0x15   : > { %714 = vmatpush3.bf16.msra.mxu1 %v746_v8  ;;  %v761_v27 = vld [vmem:[%s918_s3 + $0x80] sm:$0xff]   ;;  %v248_v28 = vadd.f32 %v643_v24, %v240_v26 }
  0x16   : > { %683 = vmatpush3.bf16.msra.mxu0 %v747_v9  ;;  %715 = vmatprep.subr.bf16.mxu1 %v771_v1  ;;  %v762_v29 = vld [vmem:[%s918_s3] sm:$0xff]  }
  0x17   : > { %684 = vmatprep.subr.bf16.mxu0 %v748_v10  ;;  %v249_v30 = vmax.f32 %v248_v28, 0.0 }
  0x19   : > { %716 = vmatpush3.bf16.msra.mxu1 %v749_v11  ;;  %v260_v31 = vpack.c.bf16 %v249_v30, %v249_v30  ;;  %v255_v32 = vrot.slane %v249_v30, 1  ;;  %v251_v33 = vrot.slane %v249_v30, 7 }
  0x1a   : > { %685 = vmatpush3.bf16.msra.mxu0 %v750_v12  ;;  %717 = vmatprep.subr.bf16.mxu1 %v771_v1 }
  0x1b   : > { %686 = vmatprep.subr.bf16.mxu0 %v751_v13  ;;  %486 = vmatprep.mubr.bf16.mxu0 %v260_v31  ;;  %v674_v34 = vpack.c.bf16 %v255_v32, %v255_v32  ;;  %v671_v35 = vpack.c.bf16 %v251_v33, %v251_v33 }
  0x1d   : > { %718 = vmatpush3.bf16.msra.mxu1 %v752_v14 }
  0x1e   : > { %687 = vmatpush3.bf16.msra.mxu0 %v753_v15  ;;  %719 = vmatprep.subr.bf16.mxu1 %v771_v1 }
  0x1f   : > { %688 = vmatprep.subr.bf16.mxu0 %v754_v16 }
  0x21   : > { %720 = vmatpush3.bf16.msra.mxu1 %v755_v17 }
  0x22   : > { %689 = vmatpush3.bf16.msra.mxu0 %v756_v18  ;;  %721 = vmatprep.subr.bf16.mxu1 %v771_v1 }
  0x23   : > { %690 = vmatprep.subr.bf16.mxu0 %v757_v19 }
  0x25   : > { %722 = vmatpush3.bf16.msra.mxu1 %v758_v20 }
  0x26   : > { %691 = vmatpush3.bf16.msra.mxu0 %v759_v21  ;;  %723 = vmatprep.subr.bf16.mxu1 %v771_v1 }
  0x27   : > { %692 = vmatprep.subr.bf16.mxu0 %v760_v25 }
  0x29   : > { %724 = vmatpush3.bf16.msra.mxu1 %v761_v27 }
  0x2a   : > { %693 = vmatpush3.bf16.msra.mxu0 %v762_v29 }
  0x2c   : > { %726 = vmatmul.mubr.msk.bf16.vlgmr.msra.gmra.mxu1 %vm673_vm4, %v674_v34 }
  0x2d   : > { %672 = vmatmul.mubr.msk.bf16.vlgmr.msra.gmra.mxu0 %vm670_vm5, %v671_v35 }
  0xec   : > { %v528_v36 = vpop.f32.mrf.mxu1 }
  0xed   : > { %v694_v37 = vpop.f32.mrf.mxu0 }
  0xee   : > { %v727_v38 = vpop.f32.mrf.mxu1 }
  0xef   : > { %v695_v39 = vpop.f32.mrf.mxu0 }
  0xf0   : > { %v696_v40 = vadd.f32 %v695_v39, %v694_v37  ;;  %v531_v41 = vpop.f32.mrf.mxu1 }
  0xf1   : > { %v697_v42 = vpop.f32.mrf.mxu0 }
  0xf2   : > { %v529_v43 = vadd.f32 %v696_v40, %v528_v36  ;;  %v728_v44 = vpop.f32.mrf.mxu1 }
  0xf3   : > { %v698_v45 = vpop.f32.mrf.mxu0 }
  0xf4   : > { %534 = vst [vmem:[%s226_s8] sm:$0xff] %v529_v43  ;;  %v535_v46 = vrot.slane %v529_v43, 4  ;;  %v541_v47 = vmul.f32 %v529_v43, %v529_v43 }
  0xf6   : > { %v536_v48 = vadd.f32 %v535_v46, %v529_v43  ;;  %v542_v49 = vrot.slane %v541_v47, 4 }
  0xf8   : > { %v537_v50 = vrot.slane %v536_v48, 2  ;;  %v543_v51 = vadd.f32 %v542_v49, %v541_v47 }
  0xfa   : > { %v538_v52 = vadd.f32 %v537_v50, %v536_v48  ;;  %v544_v53 = vrot.slane %v543_v51, 2 }
  0xfc   : > { %v539_v54 = vrot.slane %v538_v52, 1  ;;  %v545_v55 = vadd.f32 %v544_v53, %v543_v51 }
  0xfe   : > { %v546_v56 = vrot.slane %v545_v55, 1  ;;  %v540_v57 = vadd.f32 %v539_v54, %v538_v52 }
 0x100   : > { %v547_v58 = vadd.f32 %v546_v56, %v545_v55 }
 0x102   : > { %v548_v59 = vsel %vm253_vm1, %v540_v57, %v547_v58 }
 0x103   : > { %549 = vst [vmem:[%s230_s11] sm:$0x3] %v548_v59 }
 0x104 PF: > { %s16_s18 = sadd.s32 1, %s769_s18  }
 0x105   : > { %p13_p4 = scmp.ge.s32.totalorder %s16_s18, 4  }
 0x107   :  { %15 = sbr.rel (!%p13_p4) target bundleno = 1 (0x1), region = 78 }

// kernel: basic_block_1d.3
= control target key start
LH: loop header
LB: loop body
LE: loop exit
PB: predicated region body
PF: predicated region fallthrough
CT: control target
= control target key end

     0   :  { %s1123_s24 = smov 0   ;;  %s1283_s0 = inlined_call_operand.vmem [shape: f32[2,9,128], index: 0, kind: input, shape index: {}]   ;;  %s1284_s1 = inlined_call_operand.vmem [shape: f32[2,9,128], index: 1, kind: input, shape index: {}]   ;;  %s1285_s2 = inlined_call_operand.vmem [shape: bf16[384,128], index: 2, kind: input, shape index: {}]   ;;  %s1286_s3 = inlined_call_operand.vmem [shape: bf16[128,128], index: 3, kind: input, shape index: {}]   ;;  %s1287_s4 = inlined_call_operand.vmem [shape: f32[2,8,128], index: 4, kind: output, shape index: {0}]   ;;  %s1288_s5 = inlined_call_operand.vmem [shape: f32[2,8,128], index: 5, kind: output, shape index: {1}]   ;;  %s1289_s6 = inlined_call_operand.vmem [shape: f32[2,2,128], index: 6, kind: output, shape index: {2}]   ;;  %s1290_s7 = inlined_call_operand.vmem [shape: f32[2,2,128], index: 7, kind: output, shape index: {3}]  }
   0x1 LB: > { %s902_s25 = sadd.s32 4294967295, %s1079_s24   ;;  %p906_p0 = scmp.ge.s32.totalorder %s1079_s24, 1  ;;  %s1079_s24 = sphi %s1123_s24, %s18_s24  }
   0x2   : > { %p254_p1 = scmp.lt.s32.totalorder %s1079_s24, 3 }
   0x4   : > { %p255_p2 = pnand %p906_p0, %p254_p1 }
   0x5   : > { %p302_p3 = scmp.lt.s32.totalorder (!%p255_p2), %s902_s25, 1 }
   0x6   : > { %258 = sbr.rel (%p255_p2) target bundleno = 285 (0x11d), region = 36 }
   0xb   : > { %v1041_v0 = vld [vmem:[%s1285_s2 + $0x78] sm:$0xff]   ;;  %v1081_v2 = vmov 0.0   ;;  %v1043_v3 = vld [vmem:[%s1285_s2 + $0x70] sm:$0xff]   ;;  %vm1082_vm0 = vmmov 0   ;;  %v1046_v6 = vld [vmem:[%s1285_s2 + $0x68] sm:$0xff]   ;;  %s1292_s25 = smov (!%p302_p3, %s902_s25), 1 }
   0xc   : > { %v1042_v1 = vld [vmem:[%s1285_s2 + $0x38] sm:$0xff]   ;;  %991 = vmatprep.subr.bf16.mxu1 %v1081_v2  ;;  %951 = vmatprep.subr.bf16.mxu0 %v1041_v0  ;;  %v1044_v4 = vld [vmem:[%s1285_s2 + $0x30] sm:$0xff]   ;;  %v1047_v7 = vld [vmem:[%s1285_s2 + $0x28] sm:$0xff]   ;;  %s949_s12 = sshll.u32 %s1292_s25, 4  ;;  %s911_s11 = sshll.u32 %s1292_s25, 3  ;;  %vm621_vm1 = vcmask 1040384  }
   0xd   : > { %952 = vmatpush3.bf16.msra.mxu0 %v1042_v1  ;;  %1007 = vmatprep.mubr.msk.bf16.mxu1 %vm1082_vm0, %v1081_v2  ;;  %v1045_v5 = vld [vmem:[%s1285_s2 + $0xb8] sm:$0xff]   ;;  %v1048_v8 = vld [vmem:[%s1285_s2 + $0xb0] sm:$0xff]   ;;  %v1049_v9 = vld [vmem:[%s1285_s2 + $0x60] sm:$0xff]   ;;  %s311_s21 = scalar_lea.vmem %s1284_s1, %s949_s12  ;;  %s306_s9 = scalar_lea.vmem %s1283_s0, %s949_s12 }
   0xe   : > { %953 = vmatprep.subr.bf16.mxu0 %v1043_v3  ;;  %992 = vmatpush3.bf16.msra.mxu1 %v1045_v5  ;;  %v1051_v10 = vld [vmem:[%s1285_s2 + $0xa8] sm:$0xff]   ;;  %v1050_v11 = vld [vmem:[%s1285_s2 + $0x20] sm:$0xff]   ;;  %v1052_v12 = vld [vmem:[%s1285_s2 + $0x58] sm:$0xff]   ;;  %s315_s15 = scalar_lea.vmem %s1287_s4, %s911_s11  ;;  %s913_s16 = sshll.u32 %s1292_s25, 1 }
   0xf   : > { %993 = vmatprep.subr.bf16.mxu1 %v1081_v2  ;;  %v1054_v13 = vld [vmem:[%s1285_s2 + $0xa0] sm:$0xff]   ;;  %v1053_v14 = vld [vmem:[%s1285_s2 + $0x18] sm:$0xff]   ;;  %v1055_v15 = vld [vmem:[%s1285_s2 + $0x50] sm:$0xff]   ;;  %s323_s18 = scalar_lea.vmem %s1289_s6, %s913_s16  ;;  %s327_s23 = scalar_lea.vmem %s1290_s7, %s913_s16 }
  0x10   : > { %v1057_v16 = vld [vmem:[%s1285_s2 + $0x98] sm:$0xff]   ;;  %v1056_v17 = vld [vmem:[%s1285_s2 + $0x10] sm:$0xff]   ;;  %v1058_v18 = vld [vmem:[%s1285_s2 + $0x48] sm:$0xff]  }
  0x11   : > { %954 = vmatpush3.bf16.msra.mxu0 %v1044_v4  ;;  %v1060_v19 = vld [vmem:[%s1285_s2 + $0x90] sm:$0xff]   ;;  %v1059_v20 = vld [vmem:[%s1285_s2 + $0x8] sm:$0xff]   ;;  %v330_v21 = vld [vmem:[%s311_s21] sm:$0xff]  ;;  %s319_s21 = scalar_lea.vmem %s1288_s5, %s911_s11 }
  0x12   : > { %955 = vmatprep.subr.bf16.mxu0 %v1046_v6  ;;  %994 = vmatpush3.bf16.msra.mxu1 %v1048_v8  ;;  %v1061_v22 = vld [vmem:[%s1285_s2 + $0x40] sm:$0xff]   ;;  %v333_v23 = vpack.c.bf16 %v330_v21, %v330_v21  ;;  %v1063_v25 = vld [vmem:[%s1285_s2 + $0x88] sm:$0xff]   ;;  %v1065_v30 = vld [vmem:[%s1286_s3 + $0x38] sm:$0xff]  }
  0x13   : > { %995 = vmatprep.subr.bf16.mxu1 %v1081_v2  ;;  %v1062_v24 = vld [vmem:[%s1285_s2] sm:$0xff]   ;;  %v1066_v32 = vld [vmem:[%s1286_s3 + $0x30] sm:$0xff]   ;;  %v1067_v33 = vld [vmem:[%s1286_s3 + $0x28] sm:$0xff]  }
  0x14   : > { %559 = vmatprep.mubr.bf16.mxu0 %v333_v23  ;;  %v329_v26 = vld [vmem:[%s306_s9] sm:$0xff]  ;;  %v1069_v35 = vld [vmem:[%s1286_s3 + $0x18] sm:$0xff]   ;;  %v1070_v36 = vld [vmem:[%s1286_s3 + $0x10] sm:$0xff]  }
  0x15   : > { %956 = vmatpush3.bf16.msra.mxu0 %v1047_v7  ;;  %v1064_v27 = vld [vmem:[%s1285_s2 + $0x80] sm:$0xff]   ;;  %v332_v28 = vpack.c.bf16 %v329_v26, %v329_v26  ;;  %v1071_v37 = vld [vmem:[%s1286_s3 + $0x8] sm:$0xff]  }
  0x16   : > { %957 = vmatprep.subr.bf16.mxu0 %v1049_v9  ;;  %996 = vmatpush3.bf16.msra.mxu1 %v1051_v10  ;;  %v331_v29 = vld [vmem:[%s306_s9 + $0x1] sm:$0xff] }
  0x17   : > { %997 = vmatprep.subr.bf16.mxu1 %v1081_v2  ;;  %v334_v31 = vpack.c.bf16 %v331_v29, %v331_v29  ;;  %v1068_v34 = vld [vmem:[%s1286_s3 + $0x20] sm:$0xff]  }
  0x18   : > { %v1072_v38 = vld [vmem:[%s1286_s3] sm:$0xff]  }
  0x19   : > { %958 = vmatpush3.bf16.msra.mxu0 %v1050_v11 }
  0x1a   : > { %959 = vmatprep.subr.bf16.mxu0 %v1052_v12  ;;  %998 = vmatpush3.bf16.msra.mxu1 %v1054_v13 }
  0x1b   : > { %999 = vmatprep.subr.bf16.mxu1 %v1081_v2 }
  0x1d   : > { %960 = vmatpush3.bf16.msra.mxu0 %v1053_v14 }
  0x1e   : > { %961 = vmatprep.subr.bf16.mxu0 %v1055_v15  ;;  %1000 = vmatpush3.bf16.msra.mxu1 %v1057_v16 }
  0x1f   : > { %1001 = vmatprep.subr.bf16.mxu1 %v1081_v2 }
  0x21   : > { %962 = vmatpush3.bf16.msra.mxu0 %v1056_v17 }
  0x22   : > { %963 = vmatprep.subr.bf16.mxu0 %v1058_v18  ;;  %1002 = vmatpush3.bf16.msra.mxu1 %v1060_v19 }
  0x23   : > { %1003 = vmatprep.subr.bf16.mxu1 %v1081_v2 }
  0x25   : > { %964 = vmatpush3.bf16.msra.mxu0 %v1059_v20 }
  0x26   : > { %965 = vmatprep.subr.bf16.mxu0 %v1061_v22  ;;  %1004 = vmatpush3.bf16.msra.mxu1 %v1063_v25 }
  0x27   : > { %1005 = vmatprep.subr.bf16.mxu1 %v1081_v2 }
  0x29   : > { %966 = vmatpush3.bf16.msra.mxu0 %v1062_v24 }
  0x2a   : > { %1011 = vmatprep.subr.bf16.mxu0 %v1081_v2  ;;  %1006 = vmatpush3.bf16.msra.mxu1 %v1064_v27 }
  0x2c   : > { %560 = vmatmul.mubr.bf16.vlgmr.msra.gmra.mxu0 %v332_v28 }
  0x2d   : > { %1012 = vmatpush3.bf16.msra.mxu0 %v1065_v30  ;;  %1027 = vmatprep.mubr.msk.bf16.mxu0 %vm1082_vm0, %v1081_v2 }
  0x2e   : > { %1013 = vmatprep.subr.bf16.mxu0 %v1081_v2  ;;  %1008 = vmatmul.mubr.bf16.vlgmr.msra.gmra.mxu1 %v334_v31 }
  0x31   : > { %1014 = vmatpush3.bf16.msra.mxu0 %v1066_v32 }
  0x32   : > { %1015 = vmatprep.subr.bf16.mxu0 %v1081_v2 }
  0x35   : > { %1016 = vmatpush3.bf16.msra.mxu0 %v1067_v33 }
  0x36   : > { %1017 = vmatprep.subr.bf16.mxu0 %v1081_v2 }
  0x39   : > { %1018 = vmatpush3.bf16.msra.mxu0 %v1068_v34 }
  0x3a   : > { %1019 = vmatprep.subr.bf16.mxu0 %v1081_v2 }
  0x3d   : > { %1020 = vmatpush3.bf16.msra.mxu0 %v1069_v35 }
  0x3e   : > { %1021 = vmatprep.subr.bf16.mxu0 %v1081_v2 }
  0x41   : > { %1022 = vmatpush3.bf16.msra.mxu0 %v1070_v36 }
  0x42   : > { %1023 = vmatprep.subr.bf16.mxu0 %v1081_v2 }
  0x45   : > { %1024 = vmatpush3.bf16.msra.mxu0 %v1071_v37 }
  0x46   : > { %1025 = vmatprep.subr.bf16.mxu0 %v1081_v2 }
  0x49   : > { %1026 = vmatpush3.bf16.msra.mxu0 %v1072_v38 }
  0x4c   : > { %1028 = vmatmul.mubr.bf16.vlgmr.msra.gmra.mxu0 %v333_v23 }
  0xec   : > { %v967_v39 = vpop.f32.mrf.mxu0 }
  0xee   : > { %v968_v40 = vpop.f32.mrf.mxu0  ;;  %v601_v42 = vpop.f32.mrf.mxu1 }
  0xef   : > { %v969_v41 = vadd.f32 %v968_v40, %v967_v39 }
  0xf0   : > { %v970_v43 = vpop.f32.mrf.mxu0  ;;  %v1009_v45 = vpop.f32.mrf.mxu1 }
  0xf1   : > { %v602_v44 = vadd.f32 %v969_v41, %v601_v42 }
  0xf2   : > { %v971_v46 = vpop.f32.mrf.mxu0  ;;  %v604_v49 = vpop.f32.mrf.mxu1 }
  0xf3   : > { %v608_v47 = vrot.slane %v602_v44, 4  ;;  %v614_v48 = vmul.f32 %v602_v44, %v602_v44  ;;  %607 = vst [vmem:[%s315_s15] sm:$0xff] %v602_v44 }
  0xf4   : > { %v1010_v52 = vpop.f32.mrf.mxu1 }
  0xf5   : > { %v609_v50 = vadd.f32 %v608_v47, %v602_v44  ;;  %v615_v51 = vrot.slane %v614_v48, 4 }
  0xf7   : > { %v610_v53 = vrot.slane %v609_v50, 2  ;;  %v616_v54 = vadd.f32 %v615_v51, %v614_v48 }
  0xf9   : > { %v611_v55 = vadd.f32 %v610_v53, %v609_v50  ;;  %v617_v56 = vrot.slane %v616_v54, 2 }
  0xfb   : > { %v612_v57 = vrot.slane %v611_v55, 1  ;;  %v618_v58 = vadd.f32 %v617_v56, %v616_v54 }
  0xfd   : > { %v619_v59 = vrot.slane %v618_v58, 1  ;;  %v613_v60 = vadd.f32 %v612_v57, %v611_v55 }
  0xff   : > { %v620_v61 = vadd.f32 %v619_v59, %v618_v58 }
 0x101   : > { %v622_v62 = vsel %vm621_vm1, %v613_v60, %v620_v61 }
 0x102   : > { %623 = vst [vmem:[%s323_s18] sm:$0x3] %v622_v62 }
 0x10c   : > { %v722_v63 = vpop.f32.mrf.mxu0 }
 0x10d   : > { %728 = vst [vmem:[%s319_s21] sm:$0xff] %v722_v63  ;;  %v729_v0 = vrot.slane %v722_v63, 4  ;;  %v735_v1 = vmul.f32 %v722_v63, %v722_v63 }
 0x10e   : > { %v1029_v2 = vpop.f32.mrf.mxu0 }
 0x10f   : > { %v730_v3 = vadd.f32 %v729_v0, %v722_v63  ;;  %v736_v4 = vrot.slane %v735_v1, 4 }
 0x110   : > { %v725_v5 = vpop.f32.mrf.mxu0 }
 0x111   : > { %v731_v6 = vrot.slane %v730_v3, 2  ;;  %v737_v7 = vadd.f32 %v736_v4, %v735_v1 }
 0x112   : > { %v1030_v8 = vpop.f32.mrf.mxu0 }
 0x113   : > { %v732_v9 = vadd.f32 %v731_v6, %v730_v3  ;;  %v738_v10 = vrot.slane %v737_v7, 2 }
 0x115   : > { %v733_v11 = vrot.slane %v732_v9, 1  ;;  %v739_v12 = vadd.f32 %v738_v10, %v737_v7 }
 0x117   : > { %v740_v13 = vrot.slane %v739_v12, 1  ;;  %v734_v14 = vadd.f32 %v733_v11, %v732_v9 }
 0x119   : > { %v741_v15 = vadd.f32 %v740_v13, %v739_v12 }
 0x11b   : > { %v742_v16 = vsel %vm621_vm1, %v734_v14, %v741_v15 }
 0x11c   : > { %743 = vst [vmem:[%s327_s23] sm:$0x3] %v742_v16 }
 0x11d PF: > { %s18_s24 = sadd.s32 1, %s1079_s24  }
 0x11e   : > { %p15_p4 = scmp.ge.s32.totalorder %s18_s24, 4  }
 0x120   :  { %17 = sbr.rel (!%p15_p4) target bundleno = 1 (0x1), region = 105 }

</bundles_post_ra>
